<compile_context>
chip_gen: v6e
topology: v6e:2x2x1
jax: 0.10.0
libtpu: 0.0.40
codegen_flags: <defaults>
</compile_context>

<pallas_src>
import functools

import jax
import jax.numpy as jnp
from jax.experimental import pallas as pl
from jax.experimental.pallas import tpu as pltpu


def _round_up(n, m):
    return ((n + m - 1) // m) * m


def _pad_cols(a, cols):
    return jnp.pad(a, ((0, 0), (0, cols - a.shape[1])))


def vae_kernel(x_ref, we_ref, be_ref, wd_ref, bd_ref, eps_ref, out_ref,
               *, lp, latent, compute_dtype):
    """One batch tile of the fused VAE forward.

    x_ref   : (TB, D)          input tile (compute_dtype)
    we_ref  : (D, 2*Lp)        [W_mean | W_var]  (resident, compute_dtype)
    be_ref  : (1, 2*Lp)        [b_mean | b_var]  (resident, f32)
    wd_ref  : (L, Op)          decoder weight    (resident, compute_dtype)
    bd_ref  : (1, Op)          decoder bias      (resident, f32)
    eps_ref : (TB, L)          pre-sampled N(0,1) (compute_dtype)
    out_ref : (TB, 2*Lp + Op)  packed [mean | log_var | x_hat] (f32)
    """
    # Fused encoder: single MXU pass produces [mean | log_var], f32 accumulate.
    enc = jnp.dot(x_ref[...], we_ref[...],
                  preferred_element_type=jnp.float32) + be_ref[...]
    mean = enc[:, :latent]
    log_var = enc[:, lp:lp + latent]

    # Reparameterization in f32: z = mean + exp(0.5*log_var) * eps
    eps = eps_ref[...].astype(jnp.float32)
    z = mean + jnp.exp(0.5 * log_var) * eps

    # Decoder: x_hat = z @ W_dec + b_dec (f32 accumulate).
    x_hat = jnp.dot(z.astype(compute_dtype), wd_ref[...],
                    preferred_element_type=jnp.float32) + bd_ref[...]

    # Single lane-dense packed writeback: [mean | log_var | x_hat].
    out_ref[:, :2 * lp] = enc.astype(out_ref.dtype)
    out_ref[:, 2 * lp:] = x_hat.astype(out_ref.dtype)


def vae_network_forward(x, params, eps, *, compute_dtype=jnp.float32, tb=None):
    """Pallas-backed VAE_Network.forward.  Returns (x_hat, mean, log_var)."""
    wm, bm, wv, bv, wd, bd = params           # weights stored (in, out)
    B, input_dim = x.shape
    latent_dim = wm.shape[1]
    output_dim = wd.shape[1]

    # Only the (small, resident) weight lane dims get zero-padded to 128
    # multiples so the split / output slab stay lane-aligned; x and eps are
    # streamed exactly as given (no extra HBM pad pass).
    Lp = _round_up(latent_dim, 128)
    Op = _round_up(output_dim, 128)
    out_w = 2 * Lp + Op

    if tb is None:
        if B <= 8:
            tb = B
        else:
            # >= ~4 grid steps (feeds both v7x TCs, keeps pipeline >=2 deep),
            # capped at 512 rows (measured v6e/v5e mem-bound sweet spot).
            tb = min(512, max(8, _round_up(-(-B // 4), 8)))
    grid = (pl.cdiv(B, tb),)

    # One-time wrapper-side casts (no per-grid-step casts in the kernel).
    # With the default f32 these are all no-ops.  Biases stay f32 (they are
    # added to the f32 MXU accumulators).
    x_c = x.astype(compute_dtype)
    eps_c = eps.astype(compute_dtype)
    w_enc = jnp.concatenate([_pad_cols(wm, Lp), _pad_cols(wv, Lp)],
                            axis=1).astype(compute_dtype)            # (D, 2*Lp)
    b_enc = jnp.concatenate([_pad_cols(bm, Lp), _pad_cols(bv, Lp)], axis=1)
    w_dec = _pad_cols(wd, Op).astype(compute_dtype)                  # (L, Op)
    b_dec = _pad_cols(bd, Op)                                        # (1, Op)

    kernel = functools.partial(vae_kernel, lp=Lp, latent=latent_dim,
                               compute_dtype=compute_dtype)

    # Explicit VMEM budget: 2x (double-buffered) streamed tiles + (worst case
    # 2x) resident weights, with headroom.  Capped at 64 MiB (v7x physical).
    cd_bytes = jnp.dtype(compute_dtype).itemsize
    stream_bytes = 2 * tb * (input_dim * cd_bytes + latent_dim * cd_bytes
                             + out_w * 4)
    weight_bytes = 2 * (input_dim * 2 * Lp * cd_bytes + 2 * Lp * 4
                        + latent_dim * Op * cd_bytes + Op * 4)
    vmem_limit = int(min(64 << 20,
                         max(int(1.25 * (stream_bytes + weight_bytes))
                             + (4 << 20), 32 << 20)))

    def call(single_buffer_weights):
        # Resident operands (constant index_map) don't need double buffering.
        res_kw = ({"pipeline_mode": pl.Buffered(1)}
                  if single_buffer_weights else {})
        return pl.pallas_call(
            kernel,
            out_shape=jax.ShapeDtypeStruct((B, out_w), jnp.float32),
            grid=grid,
            in_specs=[
                pl.BlockSpec((tb, input_dim), lambda i: (i, 0)),       # x tile
                pl.BlockSpec((input_dim, 2 * Lp), lambda i: (0, 0), **res_kw),
                pl.BlockSpec((1, 2 * Lp), lambda i: (0, 0), **res_kw),
                pl.BlockSpec((latent_dim, Op), lambda i: (0, 0), **res_kw),
                pl.BlockSpec((1, Op), lambda i: (0, 0), **res_kw),
                pl.BlockSpec((tb, latent_dim), lambda i: (i, 0)),      # eps
            ],
            out_specs=pl.BlockSpec((tb, out_w), lambda i: (i, 0)),
            compiler_params=pltpu.CompilerParams(
                dimension_semantics=("parallel",),
                vmem_limit_bytes=vmem_limit),
        )(x_c, w_enc, b_enc, w_dec, b_dec, eps_c)

    try:
        out = call(True)
    except Exception:
        # pipeline_mode / Buffered(1) not supported by this Pallas build:
        # fall back to default (double-buffered) resident weights.
        out = call(False)

    mean = out[:, :latent_dim]
    log_var = out[:, Lp:Lp + latent_dim]
    x_hat = out[:, 2 * Lp:2 * Lp + output_dim]
    return x_hat, mean, log_var


def init_params(key, input_dim, latent_dim, output_dim):
    """trunc_normal(0, 0.01) weights, zero biases, matching the module.
    Weights stored (in_features, out_features) so the kernel computes x @ W."""
    k1, k2, k3 = jax.random.split(key, 3)

    def trunc_normal(k, shape, std=0.01):
        # torch trunc_normal_ default bounds a=-2, b=2 are absolute; at
        # std=0.01 that's +/-200 sigma, i.e. effectively a plain normal.
        return jax.random.truncated_normal(k, -2.0, 2.0, shape, jnp.float32) * std

    wm = trunc_normal(k1, (input_dim, latent_dim))
    bm = jnp.zeros((1, latent_dim), jnp.float32)
    wv = trunc_normal(k2, (input_dim, latent_dim))
    bv = jnp.zeros((1, latent_dim), jnp.float32)
    wd = trunc_normal(k3, (latent_dim, output_dim))
    bd = jnp.zeros((1, output_dim), jnp.float32)
    return (wm, bm, wv, bv, wd, bd)


def reference_forward(x, params, eps):
    """Pure-JAX reference (mirrors the PyTorch module's forward)."""
    wm, bm, wv, bv, wd, bd = params
    mean = x @ wm + bm
    log_var = x @ wv + bv
    z = mean + jnp.exp(0.5 * log_var) * eps
    x_hat = z @ wd + bd
    return x_hat, mean, log_var


if __name__ == "__main__":
    B, input_dim, latent_dim, output_dim = 8, 32, 16, 32

    key = jax.random.PRNGKey(0)
    k_x, k_eps, k_p = jax.random.split(key, 3)

    x = jax.random.normal(k_x, (B, input_dim), jnp.float32)
    # epsilon pre-sampled in JAX (mirrors torch.randn_like in reparameterization)
    eps = jax.random.normal(k_eps, (B, latent_dim), jnp.float32)
    params = init_params(k_p, input_dim, latent_dim, output_dim)

    rx, rm, rv = reference_forward(x, params, eps)

    # Exact f32 path (default): must match the reference to 1e-5.
    x_hat, mean, log_var = vae_network_forward(x, params, eps)
    jax.block_until_ready((x_hat, mean, log_var))
    assert jnp.allclose(x_hat, rx, atol=1e-5), "x_hat mismatch"
    assert jnp.allclose(mean, rm, atol=1e-5), "mean mismatch"
    assert jnp.allclose(log_var, rv, atol=1e-5), "log_var mismatch"

    # bf16 MXU-operand path (recommended on v6e/v7x): f32 accumulation, so a
    # relaxed tolerance suffices.
    bx_hat, b_mean, b_logv = vae_network_forward(
        x, params, eps, compute_dtype=jnp.bfloat16)
    jax.block_until_ready((bx_hat, b_mean, b_logv))
    assert jnp.allclose(bx_hat, rx, atol=5e-2, rtol=5e-2), "bf16 x_hat mismatch"
    assert jnp.allclose(b_mean, rm, atol=5e-2, rtol=5e-2), "bf16 mean mismatch"

    print("KERNEL_OK")
</pallas_src>

<mosaic_0001>
module attributes {stable_mosaic.version = 11 : i64} {
  func.func @vae_kernel(%arg0: i32, %arg1: memref<8x32xf32, #tpu.memory_space<vmem>>, %arg2: memref<32x256xf32, #tpu.memory_space<vmem>>, %arg3: memref<1x256xf32, #tpu.memory_space<vmem>>, %arg4: memref<16x128xf32, #tpu.memory_space<vmem>>, %arg5: memref<1x128xf32, #tpu.memory_space<vmem>>, %arg6: memref<8x16xf32, #tpu.memory_space<vmem>>, %arg7: memref<8x384xf32, #tpu.memory_space<vmem>>) attributes {dimension_semantics = [#tpu.dimension_semantics<parallel>], iteration_bounds = array<i64: 1>, scalar_prefetch = 0 : i64, scratch_operands = 0 : i64, tpu.core_type = #tpu.core_type<tc>, window_params = [{transform_indices = @transform_0, window_bounds = array<i64: 8, 32>}, {pipeline_mode = #tpu.pipeline_mode<synchronous>, transform_indices = @transform_1, window_bounds = array<i64: 32, 256>}, {pipeline_mode = #tpu.pipeline_mode<synchronous>, transform_indices = @transform_2, window_bounds = array<i64: 1, 256>}, {pipeline_mode = #tpu.pipeline_mode<synchronous>, transform_indices = @transform_3, window_bounds = array<i64: 16, 128>}, {pipeline_mode = #tpu.pipeline_mode<synchronous>, transform_indices = @transform_4, window_bounds = array<i64: 1, 128>}, {transform_indices = @transform_5, window_bounds = array<i64: 8, 16>}, {transform_indices = @transform_6, window_bounds = array<i64: 8, 384>}]} {
    %c0 = arith.constant 0 : index
    %c0_0 = arith.constant 0 : index
    %0 = vector.load %arg1[%c0, %c0_0] : memref<8x32xf32, #tpu.memory_space<vmem>>, vector<8x32xf32>
    %c0_1 = arith.constant 0 : index
    %c0_2 = arith.constant 0 : index
    %1 = vector.load %arg2[%c0_1, %c0_2] : memref<32x256xf32, #tpu.memory_space<vmem>>, vector<32x256xf32>
    %cst = arith.constant dense<0.000000e+00> : vector<8x256xf32>
    %2 = tpu.matmul %0, %1, %cst {dimension_numbers = #tpu.dot_dimension_numbers<[1], [0], [0], [1], [0, 0, 1, 1], [], []>} : vector<8x32xf32>, vector<32x256xf32>, vector<8x256xf32> -> vector<8x256xf32>
    %c0_3 = arith.constant 0 : index
    %c0_4 = arith.constant 0 : index
    %3 = vector.load %arg3[%c0_3, %c0_4] : memref<1x256xf32, #tpu.memory_space<vmem>>, vector<1x256xf32>
    %4 = vector.broadcast %3 : vector<1x256xf32> to vector<8x256xf32>
    %5 = arith.addf %2, %4 : vector<8x256xf32>
    %6 = vector.extract_strided_slice %5 {offsets = [0, 0], sizes = [8, 16], strides = [1, 1]} : vector<8x256xf32> to vector<8x16xf32>
    %7 = vector.extract_strided_slice %5 {offsets = [0, 128], sizes = [8, 16], strides = [1, 1]} : vector<8x256xf32> to vector<8x16xf32>
    %c0_5 = arith.constant 0 : index
    %c0_6 = arith.constant 0 : index
    %8 = vector.load %arg6[%c0_5, %c0_6] : memref<8x16xf32, #tpu.memory_space<vmem>>, vector<8x16xf32>
    %cst_7 = arith.constant 5.000000e-01 : f32
    %9 = vector.broadcast %cst_7 : f32 to vector<8x16xf32>
    %10 = arith.mulf %9, %7 : vector<8x16xf32>
    %11 = math.exp %10 : vector<8x16xf32>
    %12 = arith.mulf %11, %8 : vector<8x16xf32>
    %13 = arith.addf %6, %12 : vector<8x16xf32>
    %c0_8 = arith.constant 0 : index
    %c0_9 = arith.constant 0 : index
    %14 = vector.load %arg4[%c0_8, %c0_9] : memref<16x128xf32, #tpu.memory_space<vmem>>, vector<16x128xf32>
    %cst_10 = arith.constant dense<0.000000e+00> : vector<8x128xf32>
    %15 = tpu.matmul %13, %14, %cst_10 {dimension_numbers = #tpu.dot_dimension_numbers<[1], [0], [0], [1], [0, 0, 1, 1], [], []>} : vector<8x16xf32>, vector<16x128xf32>, vector<8x128xf32> -> vector<8x128xf32>
    %c0_11 = arith.constant 0 : index
    %c0_12 = arith.constant 0 : index
    %16 = vector.load %arg5[%c0_11, %c0_12] : memref<1x128xf32, #tpu.memory_space<vmem>>, vector<1x128xf32>
    %17 = vector.broadcast %16 : vector<1x128xf32> to vector<8x128xf32>
    %18 = arith.addf %15, %17 : vector<8x128xf32>
    %c0_13 = arith.constant 0 : index
    %c0_14 = arith.constant 0 : index
    %19 = vector.load %arg7[%c0_13, %c0_14] : memref<8x384xf32, #tpu.memory_space<vmem>>, vector<8x256xf32>
    tpu.vector_store %arg7[%c0_13, %c0_14], %5 {strides = array<i32>} : memref<8x384xf32, #tpu.memory_space<vmem>>, vector<8x256xf32>,
    %c0_15 = arith.constant 0 : index
    %c256 = arith.constant 256 : index
    %20 = vector.load %arg7[%c0_15, %c256] : memref<8x384xf32, #tpu.memory_space<vmem>>, vector<8x128xf32>
    tpu.vector_store %arg7[%c0_15, %c256], %18 {strides = array<i32>} : memref<8x384xf32, #tpu.memory_space<vmem>>, vector<8x128xf32>,
    return
  }
  func.func @transform_0(%arg0: i32) -> (i32, i32) {
    %c0_i32 = arith.constant 0 : i32
    %c0_i32_0 = arith.constant 0 : i32
    return %arg0, %c0_i32 : i32, i32
  }
  func.func @transform_1(%arg0: i32) -> (i32, i32) {
    %c0_i32 = arith.constant 0 : i32
    %c0_i32_0 = arith.constant 0 : i32
    %c0_i32_1 = arith.constant 0 : i32
    return %c0_i32, %c0_i32_0 : i32, i32
  }
  func.func @transform_2(%arg0: i32) -> (i32, i32) {
    %c0_i32 = arith.constant 0 : i32
    %c0_i32_0 = arith.constant 0 : i32
    %c0_i32_1 = arith.constant 0 : i32
    return %c0_i32, %c0_i32_0 : i32, i32
  }
  func.func @transform_3(%arg0: i32) -> (i32, i32) {
    %c0_i32 = arith.constant 0 : i32
    %c0_i32_0 = arith.constant 0 : i32
    %c0_i32_1 = arith.constant 0 : i32
    return %c0_i32, %c0_i32_0 : i32, i32
  }
  func.func @transform_4(%arg0: i32) -> (i32, i32) {
    %c0_i32 = arith.constant 0 : i32
    %c0_i32_0 = arith.constant 0 : i32
    %c0_i32_1 = arith.constant 0 : i32
    return %c0_i32, %c0_i32_0 : i32, i32
  }
  func.func @transform_5(%arg0: i32) -> (i32, i32) {
    %c0_i32 = arith.constant 0 : i32
    %c0_i32_0 = arith.constant 0 : i32
    return %arg0, %c0_i32 : i32, i32
  }
  func.func @transform_6(%arg0: i32) -> (i32, i32) {
    %c0_i32 = arith.constant 0 : i32
    %c0_i32_0 = arith.constant 0 : i32
    return %arg0, %c0_i32 : i32, i32
  }
}

module attributes {stable_mosaic.version = 11 : i64} {
  func.func @vae_kernel(%arg0: i32, %arg1: memref<8x32xf32, #tpu.memory_space<vmem>>, %arg2: memref<32x256xf32, #tpu.memory_space<vmem>>, %arg3: memref<1x256xf32, #tpu.memory_space<vmem>>, %arg4: memref<16x128xf32, #tpu.memory_space<vmem>>, %arg5: memref<1x128xf32, #tpu.memory_space<vmem>>, %arg6: memref<8x16xf32, #tpu.memory_space<vmem>>, %arg7: memref<8x384xf32, #tpu.memory_space<vmem>>) attributes {dimension_semantics = [#tpu.dimension_semantics<parallel>], iteration_bounds = array<i64: 1>, scalar_prefetch = 0 : i64, scratch_operands = 0 : i64, tpu.core_type = #tpu.core_type<tc>, window_params = [{transform_indices = @transform_0, window_bounds = array<i64: 8, 32>}, {pipeline_mode = #tpu.pipeline_mode<synchronous>, transform_indices = @transform_1, window_bounds = array<i64: 32, 256>}, {pipeline_mode = #tpu.pipeline_mode<synchronous>, transform_indices = @transform_2, window_bounds = array<i64: 1, 256>}, {pipeline_mode = #tpu.pipeline_mode<synchronous>, transform_indices = @transform_3, window_bounds = array<i64: 16, 128>}, {pipeline_mode = #tpu.pipeline_mode<synchronous>, transform_indices = @transform_4, window_bounds = array<i64: 1, 128>}, {transform_indices = @transform_5, window_bounds = array<i64: 8, 16>}, {transform_indices = @transform_6, window_bounds = array<i64: 8, 384>}]} {
    %c0 = arith.constant 0 : index
    %c0_0 = arith.constant 0 : index
    %0 = vector.load %arg1[%c0, %c0_0] : memref<8x32xf32, #tpu.memory_space<vmem>>, vector<8x32xf32>
    %c0_1 = arith.constant 0 : index
    %c0_2 = arith.constant 0 : index
    %1 = vector.load %arg2[%c0_1, %c0_2] : memref<32x256xf32, #tpu.memory_space<vmem>>, vector<32x256xf32>
    %cst = arith.constant dense<0.000000e+00> : vector<8x256xf32>
    %2 = tpu.matmul %0, %1, %cst {dimension_numbers = #tpu.dot_dimension_numbers<[1], [0], [0], [1], [0, 0, 1, 1], [], []>} : vector<8x32xf32>, vector<32x256xf32>, vector<8x256xf32> -> vector<8x256xf32>
    %c0_3 = arith.constant 0 : index
    %c0_4 = arith.constant 0 : index
    %3 = vector.load %arg3[%c0_3, %c0_4] : memref<1x256xf32, #tpu.memory_space<vmem>>, vector<1x256xf32>
    %4 = vector.broadcast %3 : vector<1x256xf32> to vector<8x256xf32>
    %5 = arith.addf %2, %4 : vector<8x256xf32>
    %6 = vector.extract_strided_slice %5 {offsets = [0, 0], sizes = [8, 16], strides = [1, 1]} : vector<8x256xf32> to vector<8x16xf32>
    %7 = vector.extract_strided_slice %5 {offsets = [0, 128], sizes = [8, 16], strides = [1, 1]} : vector<8x256xf32> to vector<8x16xf32>
    %c0_5 = arith.constant 0 : index
    %c0_6 = arith.constant 0 : index
    %8 = vector.load %arg6[%c0_5, %c0_6] : memref<8x16xf32, #tpu.memory_space<vmem>>, vector<8x16xf32>
    %cst_7 = arith.constant 5.000000e-01 : f32
    %9 = vector.broadcast %cst_7 : f32 to vector<8x16xf32>
    %10 = arith.mulf %9, %7 : vector<8x16xf32>
    %11 = math.exp %10 : vector<8x16xf32>
    %12 = arith.mulf %11, %8 : vector<8x16xf32>
    %13 = arith.addf %6, %12 : vector<8x16xf32>
    %c0_8 = arith.constant 0 : index
    %c0_9 = arith.constant 0 : index
    %14 = vector.load %arg4[%c0_8, %c0_9] : memref<16x128xf32, #tpu.memory_space<vmem>>, vector<16x128xf32>
    %cst_10 = arith.constant dense<0.000000e+00> : vector<8x128xf32>
    %15 = tpu.matmul %13, %14, %cst_10 {dimension_numbers = #tpu.dot_dimension_numbers<[1], [0], [0], [1], [0, 0, 1, 1], [], []>} : vector<8x16xf32>, vector<16x128xf32>, vector<8x128xf32> -> vector<8x128xf32>
    %c0_11 = arith.constant 0 : index
    %c0_12 = arith.constant 0 : index
    %16 = vector.load %arg5[%c0_11, %c0_12] : memref<1x128xf32, #tpu.memory_space<vmem>>, vector<1x128xf32>
    %17 = vector.broadcast %16 : vector<1x128xf32> to vector<8x128xf32>
    %18 = arith.addf %15, %17 : vector<8x128xf32>
    %c0_13 = arith.constant 0 : index
    %c0_14 = arith.constant 0 : index
    %19 = vector.load %arg7[%c0_13, %c0_14] : memref<8x384xf32, #tpu.memory_space<vmem>>, vector<8x256xf32>
    tpu.vector_store %arg7[%c0_13, %c0_14], %5 {strides = array<i32>} : memref<8x384xf32, #tpu.memory_space<vmem>>, vector<8x256xf32>,
    %c0_15 = arith.constant 0 : index
    %c256 = arith.constant 256 : index
    %20 = vector.load %arg7[%c0_15, %c256] : memref<8x384xf32, #tpu.memory_space<vmem>>, vector<8x128xf32>
    tpu.vector_store %arg7[%c0_15, %c256], %18 {strides = array<i32>} : memref<8x384xf32, #tpu.memory_space<vmem>>, vector<8x128xf32>,
    return
  }
  func.func @transform_0(%arg0: i32) -> (i32, i32) {
    %c0_i32 = arith.constant 0 : i32
    %c0_i32_0 = arith.constant 0 : i32
    return %arg0, %c0_i32 : i32, i32
  }
  func.func @transform_1(%arg0: i32) -> (i32, i32) {
    %c0_i32 = arith.constant 0 : i32
    %c0_i32_0 = arith.constant 0 : i32
    %c0_i32_1 = arith.constant 0 : i32
    return %c0_i32, %c0_i32_0 : i32, i32
  }
  func.func @transform_2(%arg0: i32) -> (i32, i32) {
    %c0_i32 = arith.constant 0 : i32
    %c0_i32_0 = arith.constant 0 : i32
    %c0_i32_1 = arith.constant 0 : i32
    return %c0_i32, %c0_i32_0 : i32, i32
  }
  func.func @transform_3(%arg0: i32) -> (i32, i32) {
    %c0_i32 = arith.constant 0 : i32
    %c0_i32_0 = arith.constant 0 : i32
    %c0_i32_1 = arith.constant 0 : i32
    return %c0_i32, %c0_i32_0 : i32, i32
  }
  func.func @transform_4(%arg0: i32) -> (i32, i32) {
    %c0_i32 = arith.constant 0 : i32
    %c0_i32_0 = arith.constant 0 : i32
    %c0_i32_1 = arith.constant 0 : i32
    return %c0_i32, %c0_i32_0 : i32, i32
  }
  func.func @transform_5(%arg0: i32) -> (i32, i32) {
    %c0_i32 = arith.constant 0 : i32
    %c0_i32_0 = arith.constant 0 : i32
    return %arg0, %c0_i32 : i32, i32
  }
  func.func @transform_6(%arg0: i32) -> (i32, i32) {
    %c0_i32 = arith.constant 0 : i32
    %c0_i32_0 = arith.constant 0 : i32
    return %arg0, %c0_i32 : i32, i32
  }
}

</mosaic_0001>

<bundles_post_ra>
// kernel: tpu_custom_call.1
= control target key start
LH: loop header
LB: loop body
LE: loop exit
PB: predicated region body
PF: predicated region fallthrough
CT: control target
= control target key end

     0   :  { %11 = vsyncpa [#allocation3], 0  ;;  %s481_s0 = inlined_call_operand.hbm [shape: f32[8,32], index: 0, kind: input, shape index: {}]   ;;  %s482_s1 = inlined_call_operand.hbm [shape: f32[32,256], index: 1, kind: input, shape index: {}]   ;;  %s483_s2 = inlined_call_operand.hbm [shape: f32[1,256], index: 2, kind: input, shape index: {}]   ;;  %s484_s3 = inlined_call_operand.hbm [shape: f32[16,128], index: 3, kind: input, shape index: {}]   ;;  %s485_s4 = inlined_call_operand.vmem [shape: f32[1,128], index: 4, kind: input, shape index: {}]   ;;  %s486_s5 = inlined_call_operand.vmem [shape: f32[8,16], index: 5, kind: input, shape index: {}]   ;;  %s487_s6 = inlined_call_operand.hbm [shape: f32[8,384], index: 6, kind: output, shape index: {}]  }
   0x1   :  { %12 = vsyncpa [#allocation6], 0 }
   0x2   :  { %13 = vsyncpa [#allocation9], 0 }
   0x3   :  { %14 = vsyncpa [#allocation4], 0  ;;  %s414_s21 = smov [#allocation5]  }
   0x4   :  { %s30_s22 = sshll.u32 %s414_s21, 4  ;;  %s31_s22 = int_to_ptr.vmem [resolvable:$true] %s30_s22 }
   0x5   :  { %s314_s23 = scalar_lea.vmem %s31_s22, 1024  ;;  %p319_p1 = scmp.lt.s32.totalorder %s31_s22, %s31_s22 }
   0x6   :  { %p315_p0 = scmp.ne.s32.totalorder %s31_s22, %s314_s23  ;;  %p320_p2 = scmp.lt.s32.totalorder %s314_s23, %s314_s23 }
   0x8   :  { %p321_p3 = por %p320_p2, %p319_p1 }
   0xa   :  { %p322_p4 = pnand %p321_p3, %p315_p0 }
   0xc   :  { %325 = shalt.err (!%p322_p4)
}
   0xd   :  { %s415_s24 = smov 256   ;;  %s416_s25 = smov 16  }
   0xe   :  { %36 = dma.hbm_to_vmem [thread:$0]  %s482_s1, 1024, %s31_s22, [#allocation6], %s415_s24, %s415_s24, %s416_s25  }
   0xf   :  { %s417_s28 = smov [#allocation2]   ;;  %s418_s30 = smov [#allocation7]  }
  0x10   :  { %s21_s29 = sshll.u32 %s417_s28, 4  ;;  %s43_s7 = sshll.u32 %s418_s30, 4  ;;  %s22_s29 = int_to_ptr.vmem [resolvable:$true] %s21_s29  ;;  %s44_s7 = int_to_ptr.vmem [resolvable:$true] %s43_s7 }
  0x11   :  { %s334_s8 = scalar_lea.vmem %s22_s29, 128  ;;  %p339_p6 = scmp.lt.s32.totalorder %s22_s29, %s22_s29 }
  0x12   :  { %p335_p5 = scmp.ne.s32.totalorder %s22_s29, %s334_s8  ;;  %p340_p7 = scmp.lt.s32.totalorder %s334_s8, %s334_s8 }
  0x14   :  { %p341_p8 = por %p340_p7, %p339_p6 }
  0x16   :  { %p342_p9 = pnand %p341_p8, %p335_p5 }
  0x18   :  { %345 = shalt.err (!%p342_p9)
}
  0x19   :  { %24 = dma.hbm_to_vmem [thread:$0]  %s481_s0, 128, %s22_s29, [#allocation3]  }
  0x1a   :  { %s354_s11 = scalar_lea.vmem %s44_s7, 32  ;;  %p359_p11 = scmp.lt.s32.totalorder %s44_s7, %s44_s7 }
  0x1b   :  { %p355_p10 = scmp.ne.s32.totalorder %s44_s7, %s354_s11  ;;  %p360_p12 = scmp.lt.s32.totalorder %s354_s11, %s354_s11 }
  0x1d   :  { %p361_p13 = por %p360_p12, %p359_p11 }
  0x1f   :  { %p362_p0 = pnand %p361_p13, %p355_p10 }
  0x21   :  { %365 = shalt.err (!%p362_p0)
}
  0x22   :  { %46 = dma.hbm_to_vmem [thread:$0]  %s483_s2, 32, %s44_s7, [#allocation6]  }
  0x23   :  { %s419_s13 = smov [#allocation8]  }
  0x24   :  { %s52_s14 = sshll.u32 %s419_s13, 4  ;;  %s53_s14 = int_to_ptr.vmem [resolvable:$true] %s52_s14 }
  0x25   :  { %s374_s15 = scalar_lea.vmem %s53_s14, 256  ;;  %p379_p2 = scmp.lt.s32.totalorder %s53_s14, %s53_s14 }
  0x26   :  { %p375_p1 = scmp.ne.s32.totalorder %s53_s14, %s374_s15  ;;  %p380_p3 = scmp.lt.s32.totalorder %s374_s15, %s374_s15 }
  0x28   :  { %p381_p4 = por %p380_p3, %p379_p2 }
  0x2a   :  { %p382_p5 = pnand %p381_p4, %p375_p1 }
  0x2c   :  { %385 = shalt.err (!%p382_p5)
}
  0x2d   :  { %s420_s0 = smov 128   ;;  %s421_s16 = smov 8  }
  0x2e   :  { %58 = dma.hbm_to_vmem [thread:$0]  %s484_s3, 256, %s53_s14, [#allocation9], %s420_s0, %s420_s0, %s421_s16  }
  0x2f   :  { %406 = dma.done.wait [#allocation3], 128  }
  0x30   :  { %407 = vsyncadd [#allocation3], 4294967168 }
  0x31   :  { %408 = dma.done.wait [#allocation6], 1056  }
  0x32   :  { %409 = vsyncadd [#allocation6], 4294966240 }
  0x33   :  { %410 = dma.done.wait [#allocation9], 256  }
  0x34   :  { %411 = vsyncadd [#allocation9], 4294967040  ;;  %v422_v0 = vmov 0.0   ;;  %v83_v1 = vld [vmem:[#allocation5 + $0x38] sm:$0xff]  ;;  %v82_v2 = vld [vmem:[#allocation5 + $0x30] sm:$0xff]  ;;  %vm96_vm0 = vcmask 261120   ;;  %v86_v12 = vlaneseq }
  0x35   :  { %164 = vmatprep.mubr.f32.mxu0 %v422_v0  ;;  %286 = vmatprep.subr.mxu1 %v422_v0  ;;  %v81_v3 = vld [vmem:[#allocation5 + $0x28] sm:$0xff]  ;;  %v80_v4 = vld [vmem:[#allocation5 + $0x20] sm:$0xff]  ;;  %v79_v5 = vld [vmem:[#allocation5 + $0x18] sm:$0xff]  ;;  %vm423_vm1 = vmmov 0   ;;  %vm186_vm2 = vcmask 130048   ;;  %s424_s21 = smov [#allocation10]  }
  0x36   :  { %124 = vmatprep.subr.mxu0 %v83_v1  ;;  %v78_v6 = vld [vmem:[#allocation5 + $0x10] sm:$0xff]  ;;  %v77_v7 = vld [vmem:[#allocation5 + $0x8] sm:$0xff]  ;;  %v76_v8 = vld [vmem:[#allocation5] sm:$0xff]  ;;  %290 = vmatprep.mubr.msk.f32.mxu1 %vm423_vm1, %v422_v0  ;;  %v87_v13 = vshrl.u32 %v86_v12, 7  ;;  %s269_s22 = sshll.u32 %s424_s21, 4  ;;  %s270_s22 = int_to_ptr.vmem [resolvable:$true] %s269_s22 }
  0x37   :  { %125 = vmatpush1.msra.mxu0 %v82_v2  ;;  %v75_v9 = vld [vmem:[#allocation2] sm:$0xff]  ;;  %v178_v10 = vld [vmem:[#allocation8 + $0x8] sm:$0xff]  ;;  %v177_v11 = vld [vmem:[#allocation8] sm:$0xff]  ;;  %s386_s23 = scalar_lea.vmem %s270_s22, 384  ;;  %p391_p7 = scmp.lt.s32.totalorder %s270_s22, %s270_s22 }
  0x38   :  { %126 = vmatprep.subr.mxu0 %v81_v3  ;;  %287 = vmatpush3.msra.mxu1 %v178_v10  ;;  %v88_v14 = vsub.s32 0, %v87_v13  ;;  %v84_v15 = vld [vmem:[#allocation7] sm:$0x3]  ;;  %v92_v16 = vsub.s32 1, %v87_v13  ;;  %v171_v25 = vld [vmem:[%s486_s5] sm:$0xff]  ;;  %p387_p6 = scmp.ne.s32.totalorder %s270_s22, %s386_s23  ;;  %p392_p8 = scmp.lt.s32.totalorder %s386_s23, %s386_s23 }
  0x39   :  { %127 = vmatpush1.msra.mxu0 %v80_v4  ;;  %288 = vmatprep.subr.mxu1 %v422_v0  ;;  %v281_v29 = vld [vmem:[%s485_s4] ss:$0 sm:$0xff] }
  0x3a   :  { %128 = vmatprep.subr.mxu0 %v79_v5  ;;  %289 = vmatpush3.msra.mxu1 %v177_v11  ;;  %v89_v17 = vrot.slane %v84_v15, %v88_v14  ;;  %v93_v18 = vrot.slane %v84_v15, %v92_v16  ;;  %p393_p9 = por %p392_p8, %p391_p7 }
  0x3b   :  { %129 = vmatpush1.msra.mxu0 %v78_v6 }
  0x3c   :  { %130 = vmatprep.subr.mxu0 %v77_v7  ;;  %p394_p10 = pnand %p393_p9, %p387_p6 }
  0x3d   :  { %131 = vmatpush1.msra.mxu0 %v76_v8 }
  0x3e   :  { %280 = vmatmul.mubr.msk.f32.vlgmr.msra.gmra.mxu0 %vm96_vm0, %v75_v9 }
  0xfe   :  { %v166_v19 = vpop.f32.mrf.mxu0 }
  0xff   :  { %v167_v20 = vadd.f32 %v166_v19, %v89_v17 }
 0x100   :  { %v168_v21 = vpop.f32.mrf.mxu0 }
 0x101   :  { %260 = vst [vmem:[#allocation10] sm:$0xff] %v167_v20  ;;  %v169_v22 = vadd.f32 %v168_v21, %v93_v18 }
 0x103   :  { %v172_v23 = vmul.f32 0.5, %v169_v22  ;;  %261 = vst [vmem:[#allocation10 + $0x8] sm:$0xff] %v169_v22 }
 0x105   :  { %v173_v24 = vmul.f32 1.442695, %v172_v23 }
 0x107   :  { %304 = vpow2.f32 %v173_v24 }
 0x114   :  { %v305_v26 = vpop.eup %304 }
 0x115   :  { %v175_v27 = vmul.f32 %v305_v26, %v171_v25 }
 0x117   :  { %v176_v28 = vadd.f32 %v175_v27, %v167_v20 }
 0x119   :  { %291 = vmatmul.mubr.msk.f32.vlgmr.msra.gmra.mxu1 %vm186_vm2, %v176_v28 }
 0x1d9   :  { %v256_v30 = vpop.f32.mrf.mxu1 }
 0x1da   :  { %v257_v31 = vadd.f32 %v281_v29, %v256_v30 }
 0x1db   :  { %v292_v32 = vpop.f32.mrf.mxu1 }
 0x1dc   :  { %262 = vst [vmem:[#allocation10 + $0x10] sm:$0xff] %v257_v31 }
 0x1dd   :  { %397 = shalt.err (!%p394_p10)
}
 0x1de   :  { %272 = dma.vmem_to_hbm [thread:$0]  %s270_s22, 384, %s487_s6, [#allocation4]  }
 0x1df   :  { %412 = dma.done.wait [#allocation4], 384  }
 0x1e0   :  { %413 = vsyncadd [#allocation4], 4294966912 }
 0x1e1   :  { %276 = vsyncpa [#allocation3], 1 }
 0x1e2   :  { %277 = vsyncpa [#allocation6], 1 }
 0x1e3   :  { %278 = vsyncpa [#allocation9], 1 }
 0x1e4   :  { %279 = vsyncpa [#allocation4], 1 }

// kernel: tpu_custom_call.1
= control target key start
LH: loop header
LB: loop body
LE: loop exit
PB: predicated region body
PF: predicated region fallthrough
CT: control target
= control target key end

     0   :  { %11 = vsyncpa [#allocation3], 0  ;;  %s481_s0 = inlined_call_operand.hbm [shape: f32[8,32], index: 0, kind: input, shape index: {}]   ;;  %s482_s1 = inlined_call_operand.hbm [shape: f32[32,256], index: 1, kind: input, shape index: {}]   ;;  %s483_s2 = inlined_call_operand.hbm [shape: f32[1,256], index: 2, kind: input, shape index: {}]   ;;  %s484_s3 = inlined_call_operand.hbm [shape: f32[16,128], index: 3, kind: input, shape index: {}]   ;;  %s485_s4 = inlined_call_operand.vmem [shape: f32[1,128], index: 4, kind: input, shape index: {}]   ;;  %s486_s5 = inlined_call_operand.vmem [shape: f32[8,16], index: 5, kind: input, shape index: {}]   ;;  %s487_s6 = inlined_call_operand.hbm [shape: f32[8,384], index: 6, kind: output, shape index: {}]  }
   0x1   :  { %12 = vsyncpa [#allocation6], 0 }
   0x2   :  { %13 = vsyncpa [#allocation9], 0 }
   0x3   :  { %14 = vsyncpa [#allocation4], 0  ;;  %s414_s21 = smov [#allocation5]  }
   0x4   :  { %s30_s22 = sshll.u32 %s414_s21, 4  ;;  %s31_s22 = int_to_ptr.vmem [resolvable:$true] %s30_s22 }
   0x5   :  { %s314_s23 = scalar_lea.vmem %s31_s22, 1024  ;;  %p319_p1 = scmp.lt.s32.totalorder %s31_s22, %s31_s22 }
   0x6   :  { %p315_p0 = scmp.ne.s32.totalorder %s31_s22, %s314_s23  ;;  %p320_p2 = scmp.lt.s32.totalorder %s314_s23, %s314_s23 }
   0x8   :  { %p321_p3 = por %p320_p2, %p319_p1 }
   0xa   :  { %p322_p4 = pnand %p321_p3, %p315_p0 }
   0xc   :  { %325 = shalt.err (!%p322_p4)
}
   0xd   :  { %s415_s24 = smov 256   ;;  %s416_s25 = smov 16  }
   0xe   :  { %36 = dma.hbm_to_vmem [thread:$0]  %s482_s1, 1024, %s31_s22, [#allocation6], %s415_s24, %s415_s24, %s416_s25  }
   0xf   :  { %s417_s28 = smov [#allocation2]   ;;  %s418_s30 = smov [#allocation7]  }
  0x10   :  { %s21_s29 = sshll.u32 %s417_s28, 4  ;;  %s43_s7 = sshll.u32 %s418_s30, 4  ;;  %s22_s29 = int_to_ptr.vmem [resolvable:$true] %s21_s29  ;;  %s44_s7 = int_to_ptr.vmem [resolvable:$true] %s43_s7 }
  0x11   :  { %s334_s8 = scalar_lea.vmem %s22_s29, 128  ;;  %p339_p6 = scmp.lt.s32.totalorder %s22_s29, %s22_s29 }
  0x12   :  { %p335_p5 = scmp.ne.s32.totalorder %s22_s29, %s334_s8  ;;  %p340_p7 = scmp.lt.s32.totalorder %s334_s8, %s334_s8 }
  0x14   :  { %p341_p8 = por %p340_p7, %p339_p6 }
  0x16   :  { %p342_p9 = pnand %p341_p8, %p335_p5 }
  0x18   :  { %345 = shalt.err (!%p342_p9)
}
  0x19   :  { %24 = dma.hbm_to_vmem [thread:$0]  %s481_s0, 128, %s22_s29, [#allocation3]  }
  0x1a   :  { %s354_s11 = scalar_lea.vmem %s44_s7, 32  ;;  %p359_p11 = scmp.lt.s32.totalorder %s44_s7, %s44_s7 }
  0x1b   :  { %p355_p10 = scmp.ne.s32.totalorder %s44_s7, %s354_s11  ;;  %p360_p12 = scmp.lt.s32.totalorder %s354_s11, %s354_s11 }
  0x1d   :  { %p361_p13 = por %p360_p12, %p359_p11 }
  0x1f   :  { %p362_p0 = pnand %p361_p13, %p355_p10 }
  0x21   :  { %365 = shalt.err (!%p362_p0)
}
  0x22   :  { %46 = dma.hbm_to_vmem [thread:$0]  %s483_s2, 32, %s44_s7, [#allocation6]  }
  0x23   :  { %s419_s13 = smov [#allocation8]  }
  0x24   :  { %s52_s14 = sshll.u32 %s419_s13, 4  ;;  %s53_s14 = int_to_ptr.vmem [resolvable:$true] %s52_s14 }
  0x25   :  { %s374_s15 = scalar_lea.vmem %s53_s14, 256  ;;  %p379_p2 = scmp.lt.s32.totalorder %s53_s14, %s53_s14 }
  0x26   :  { %p375_p1 = scmp.ne.s32.totalorder %s53_s14, %s374_s15  ;;  %p380_p3 = scmp.lt.s32.totalorder %s374_s15, %s374_s15 }
  0x28   :  { %p381_p4 = por %p380_p3, %p379_p2 }
  0x2a   :  { %p382_p5 = pnand %p381_p4, %p375_p1 }
  0x2c   :  { %385 = shalt.err (!%p382_p5)
}
  0x2d   :  { %s420_s0 = smov 128   ;;  %s421_s16 = smov 8  }
  0x2e   :  { %58 = dma.hbm_to_vmem [thread:$0]  %s484_s3, 256, %s53_s14, [#allocation9], %s420_s0, %s420_s0, %s421_s16  }
  0x2f   :  { %406 = dma.done.wait [#allocation3], 128  }
  0x30   :  { %407 = vsyncadd [#allocation3], 4294967168 }
  0x31   :  { %408 = dma.done.wait [#allocation6], 1056  }
  0x32   :  { %409 = vsyncadd [#allocation6], 4294966240 }
  0x33   :  { %410 = dma.done.wait [#allocation9], 256  }
  0x34   :  { %411 = vsyncadd [#allocation9], 4294967040  ;;  %v422_v0 = vmov 0.0   ;;  %v83_v1 = vld [vmem:[#allocation5 + $0x38] sm:$0xff]  ;;  %v82_v2 = vld [vmem:[#allocation5 + $0x30] sm:$0xff]  ;;  %vm96_vm0 = vcmask 261120   ;;  %v86_v12 = vlaneseq }
  0x35   :  { %164 = vmatprep.mubr.f32.mxu0 %v422_v0  ;;  %286 = vmatprep.subr.mxu1 %v422_v0  ;;  %v81_v3 = vld [vmem:[#allocation5 + $0x28] sm:$0xff]  ;;  %v80_v4 = vld [vmem:[#allocation5 + $0x20] sm:$0xff]  ;;  %v79_v5 = vld [vmem:[#allocation5 + $0x18] sm:$0xff]  ;;  %vm423_vm1 = vmmov 0   ;;  %vm186_vm2 = vcmask 130048   ;;  %s424_s21 = smov [#allocation10]  }
  0x36   :  { %124 = vmatprep.subr.mxu0 %v83_v1  ;;  %v78_v6 = vld [vmem:[#allocation5 + $0x10] sm:$0xff]  ;;  %v77_v7 = vld [vmem:[#allocation5 + $0x8] sm:$0xff]  ;;  %v76_v8 = vld [vmem:[#allocation5] sm:$0xff]  ;;  %290 = vmatprep.mubr.msk.f32.mxu1 %vm423_vm1, %v422_v0  ;;  %v87_v13 = vshrl.u32 %v86_v12, 7  ;;  %s269_s22 = sshll.u32 %s424_s21, 4  ;;  %s270_s22 = int_to_ptr.vmem [resolvable:$true] %s269_s22 }
  0x37   :  { %125 = vmatpush1.msra.mxu0 %v82_v2  ;;  %v75_v9 = vld [vmem:[#allocation2] sm:$0xff]  ;;  %v178_v10 = vld [vmem:[#allocation8 + $0x8] sm:$0xff]  ;;  %v177_v11 = vld [vmem:[#allocation8] sm:$0xff]  ;;  %s386_s23 = scalar_lea.vmem %s270_s22, 384  ;;  %p391_p7 = scmp.lt.s32.totalorder %s270_s22, %s270_s22 }
  0x38   :  { %126 = vmatprep.subr.mxu0 %v81_v3  ;;  %287 = vmatpush3.msra.mxu1 %v178_v10  ;;  %v88_v14 = vsub.s32 0, %v87_v13  ;;  %v84_v15 = vld [vmem:[#allocation7] sm:$0x3]  ;;  %v92_v16 = vsub.s32 1, %v87_v13  ;;  %v171_v25 = vld [vmem:[%s486_s5] sm:$0xff]  ;;  %p387_p6 = scmp.ne.s32.totalorder %s270_s22, %s386_s23  ;;  %p392_p8 = scmp.lt.s32.totalorder %s386_s23, %s386_s23 }
  0x39   :  { %127 = vmatpush1.msra.mxu0 %v80_v4  ;;  %288 = vmatprep.subr.mxu1 %v422_v0  ;;  %v281_v29 = vld [vmem:[%s485_s4] ss:$0 sm:$0xff] }
  0x3a   :  { %128 = vmatprep.subr.mxu0 %v79_v5  ;;  %289 = vmatpush3.msra.mxu1 %v177_v11  ;;  %v89_v17 = vrot.slane %v84_v15, %v88_v14  ;;  %v93_v18 = vrot.slane %v84_v15, %v92_v16  ;;  %p393_p9 = por %p392_p8, %p391_p7 }
  0x3b   :  { %129 = vmatpush1.msra.mxu0 %v78_v6 }
  0x3c   :  { %130 = vmatprep.subr.mxu0 %v77_v7  ;;  %p394_p10 = pnand %p393_p9, %p387_p6 }
  0x3d   :  { %131 = vmatpush1.msra.mxu0 %v76_v8 }
  0x3e   :  { %280 = vmatmul.mubr.msk.f32.vlgmr.msra.gmra.mxu0 %vm96_vm0, %v75_v9 }
  0xfe   :  { %v166_v19 = vpop.f32.mrf.mxu0 }
  0xff   :  { %v167_v20 = vadd.f32 %v166_v19, %v89_v17 }
 0x100   :  { %v168_v21 = vpop.f32.mrf.mxu0 }
 0x101   :  { %260 = vst [vmem:[#allocation10] sm:$0xff] %v167_v20  ;;  %v169_v22 = vadd.f32 %v168_v21, %v93_v18 }
 0x103   :  { %v172_v23 = vmul.f32 0.5, %v169_v22  ;;  %261 = vst [vmem:[#allocation10 + $0x8] sm:$0xff] %v169_v22 }
 0x105   :  { %v173_v24 = vmul.f32 1.442695, %v172_v23 }
 0x107   :  { %304 = vpow2.f32 %v173_v24 }
 0x114   :  { %v305_v26 = vpop.eup %304 }
 0x115   :  { %v175_v27 = vmul.f32 %v305_v26, %v171_v25 }
 0x117   :  { %v176_v28 = vadd.f32 %v175_v27, %v167_v20 }
 0x119   :  { %291 = vmatmul.mubr.msk.f32.vlgmr.msra.gmra.mxu1 %vm186_vm2, %v176_v28 }
 0x1d9   :  { %v256_v30 = vpop.f32.mrf.mxu1 }
 0x1da   :  { %v257_v31 = vadd.f32 %v281_v29, %v256_v30 }
 0x1db   :  { %v292_v32 = vpop.f32.mrf.mxu1 }
 0x1dc   :  { %262 = vst [vmem:[#allocation10 + $0x10] sm:$0xff] %v257_v31 }
 0x1dd   :  { %397 = shalt.err (!%p394_p10)
}
 0x1de   :  { %272 = dma.vmem_to_hbm [thread:$0]  %s270_s22, 384, %s487_s6, [#allocation4]  }
 0x1df   :  { %412 = dma.done.wait [#allocation4], 384  }
 0x1e0   :  { %413 = vsyncadd [#allocation4], 4294966912 }
 0x1e1   :  { %276 = vsyncpa [#allocation3], 1 }
 0x1e2   :  { %277 = vsyncpa [#allocation6], 1 }
 0x1e3   :  { %278 = vsyncpa [#allocation9], 1 }
 0x1e4   :  { %279 = vsyncpa [#allocation4], 1 }

</bundles_post_ra>
